<compile_context>
chip_gen: v6e
topology: v6e:2x2x1
jax: 0.10.0
libtpu: 0.0.40
codegen_flags: <defaults>
</compile_context>

<pallas_src>
import functools

import jax
import jax.numpy as jnp
from jax.experimental import pallas as pl
from jax.experimental.pallas import tpu as pltpu


def _round_up(n: int, m: int) -> int:
    return ((n + m - 1) // m) * m


def _lstm_predictor_kernel(x_ref, wih_t_ref, b_ref, wtag_t_ref, btag_ref, out_ref,
                           *, hidden_dim: int):
    H = hidden_dim

    # gates: (tile_b, 4H) = x @ W_ih^T + (b_ih + b_hh); g-gate columns pre-scaled by 2.
    gates = jnp.dot(x_ref[...], wih_t_ref[...], preferred_element_type=jnp.float32)
    gates = gates + b_ref[...]  # (1, 4H) broadcast over batch rows

    # ONE full-width EUP push over the whole (tile_b, 4H = 128 lane) vreg group.
    sig_all = jax.nn.sigmoid(gates)

    # PyTorch gate order in weight_ih_l0: [i, f, g, o]; f is unused because c0 == 0.
    i_g = sig_all[:, 0 * H:1 * H]                    # sigmoid(i)
    g_g = 2.0 * sig_all[:, 2 * H:3 * H] - 1.0        # tanh(g) = 2*sigmoid(2g) - 1  (VPU)
    o_g = sig_all[:, 3 * H:4 * H]                    # sigmoid(o)

    c = i_g * g_g                                    # f-gate elided: c0 == 0
    tanh_c = 2.0 * jax.nn.sigmoid(2.0 * c) - 1.0     # second (and last) EUP push
    h = o_g * tanh_c

    # hidden2tag: (tile_b, T) = h @ W_tag^T + b_tag   (unpadded T lanes; masked vst in
    # VMEM is a micro-cost, HBM writeback stays dense at T*4 bytes/row).
    out = jnp.dot(h, wtag_t_ref[...], preferred_element_type=jnp.float32)
    out_ref[...] = (out + btag_ref[...]).astype(out_ref.dtype)


def prepare_lstm_predictor_params(w_ih, b_ih, b_hh, w_tag, b_tag):
    """One-time parameter preparation (hoisted out of the per-call hot path)."""
    H4, _D = w_ih.shape
    H = H4 // 4
    T = w_tag.shape[0]

    w_ih_t = jnp.asarray(w_ih, jnp.float32).T                      # (D, 4H)
    b = (jnp.asarray(b_ih, jnp.float32)
         + jnp.asarray(b_hh, jnp.float32))[None, :]                # (1, 4H)

    # Bake a x2 into the g-gate (3rd quarter) columns so the kernel can recover
    # tanh(g) = 2*sigmoid(2g) - 1 from its single full-width sigmoid.
    w_ih_t = w_ih_t.at[:, 2 * H:3 * H].multiply(2.0)
    b = b.at[:, 2 * H:3 * H].multiply(2.0)

    w_tag_t = jnp.asarray(w_tag, jnp.float32).T                    # (H, T), unpadded
    b_tag_p = jnp.asarray(b_tag, jnp.float32)[None, :]             # (1, T)

    return {
        "w_ih_t": w_ih_t,
        "b": b,
        "w_tag_t": w_tag_t,
        "b_tag": b_tag_p,
        "hidden_dim": H,
        "tag_dim": T,
    }


def lstm_predictor_forward(x, params, *, tile_b_max: int = 4096,
                           out_dtype=jnp.float32):
    """x: (B, input_dim) (or (B, ...) flattened, matching x.view(len(x), 1, -1)).
    Returns (B, tag_dim)."""
    x = jnp.asarray(x, jnp.float32)
    x = x.reshape(x.shape[0], -1)              # matches x.view(len(x), 1, -1)
    B, D = x.shape
    H = params["hidden_dim"]
    T = params["tag_dim"]
    w_ih_t = params["w_ih_t"]                  # (D, 4H)
    b = params["b"]                            # (1, 4H)
    w_tag_t = params["w_tag_t"]                # (H, T)
    b_tag_p = params["b_tag"]                  # (1, T)
    H4 = w_ih_t.shape[1]

    # Batch tiling: large sublane-aligned tiles (per-step overhead dominates the tiny
    # per-row DMA), but force >= 2 grid steps once B >= 16 so both v7x TensorCores get
    # work under dimension_semantics=("parallel",).
    min_steps = 2 if B >= 16 else 1
    tile_b = min(tile_b_max, max(8, _round_up(pl.cdiv(B, min_steps), 8)))
    n_steps = pl.cdiv(B, tile_b)
    B_pad = n_steps * tile_b

    # No per-call padding copy unless the last block is ragged.
    x_in = x if B_pad == B else jnp.pad(x, ((0, B_pad - B), (0, 0)))

    cost = pl.CostEstimate(
        flops=2 * B_pad * (D * H4 + H * T),
        transcendentals=B_pad * (H4 + H),
        bytes_accessed=4 * (B_pad * (D + T) + D * H4 + H4 + H * T + T),
    )

    out = pl.pallas_call(
        functools.partial(_lstm_predictor_kernel, hidden_dim=H),
        out_shape=jax.ShapeDtypeStruct((B_pad, T), out_dtype),
        grid=(n_steps,),
        in_specs=[
            pl.BlockSpec((tile_b, D), lambda i: (i, 0)),   # x: tiled over batch
            pl.BlockSpec((D, H4), lambda i: (0, 0)),       # weights stay VMEM-resident
            pl.BlockSpec((1, H4), lambda i: (0, 0)),
            pl.BlockSpec((H, T), lambda i: (0, 0)),
            pl.BlockSpec((1, T), lambda i: (0, 0)),
        ],
        out_specs=pl.BlockSpec((tile_b, T), lambda i: (i, 0)),  # unpadded T-lane store
        compiler_params=pltpu.CompilerParams(
            dimension_semantics=("parallel",),     # megacore: split batch across TCs
            vmem_limit_bytes=48 * 1024 * 1024,     # headroom for 4096-row tiles
        ),
        cost_estimate=cost,
    )(x_in, w_ih_t, b, w_tag_t, b_tag_p)

    return out if B_pad == B else out[:B]


def _reference_forward(x, w_ih, b_ih, b_hh, w_tag, b_tag):
    """Pure-JAX reference matching PyTorch nn.LSTM (seq_len=1, zero state)."""
    H = w_ih.shape[0] // 4
    gates = x @ w_ih.T + b_ih + b_hh
    i = jax.nn.sigmoid(gates[:, 0 * H:1 * H])
    g = jnp.tanh(gates[:, 2 * H:3 * H])
    o = jax.nn.sigmoid(gates[:, 3 * H:4 * H])
    c = i * g
    h = o * jnp.tanh(c)
    return h @ w_tag.T + b_tag


if __name__ == "__main__":
    INPUT_DIM = 16
    HIDDEN_DIM = 32
    TAG_DIM = 8    # synthetic hidden2tag output dim (undefined in source module)

    key = jax.random.PRNGKey(0)
    k_x, k_wih, k_bih, k_bhh, k_wt, k_bt, k_x2 = jax.random.split(key, 7)

    # Deterministic parameter init (PyTorch-style uniform(-1/sqrt(H), 1/sqrt(H))).
    bound = 1.0 / (HIDDEN_DIM ** 0.5)
    w_ih = jax.random.uniform(k_wih, (4 * HIDDEN_DIM, INPUT_DIM), jnp.float32, -bound, bound)
    b_ih = jax.random.uniform(k_bih, (4 * HIDDEN_DIM,), jnp.float32, -bound, bound)
    b_hh = jax.random.uniform(k_bhh, (4 * HIDDEN_DIM,), jnp.float32, -bound, bound)
    w_tag = jax.random.uniform(k_wt, (TAG_DIM, HIDDEN_DIM), jnp.float32, -bound, bound)
    b_tag = jax.random.uniform(k_bt, (TAG_DIM,), jnp.float32, -bound, bound)

    # Weight prep happens ONCE here (not in the per-call forward path).
    params = prepare_lstm_predictor_params(w_ih, b_ih, b_hh, w_tag, b_tag)

    # Small case from the module spec: B = len(x) = 2.
    B = 2
    x = jax.random.normal(k_x, (B, INPUT_DIM), jnp.float32)
    out = jax.block_until_ready(lstm_predictor_forward(x, params))
    ref = _reference_forward(x, w_ih, b_ih, b_hh, w_tag, b_tag)
    assert out.shape == (B, TAG_DIM)
    assert jnp.allclose(out, ref, atol=1e-5, rtol=1e-5), "mismatch vs reference (B=2)"

    # Second check exercising the multi-step grid + ragged last block path.
    B2 = 40
    x2 = jax.random.normal(k_x2, (B2, INPUT_DIM), jnp.float32)
    out2 = jax.block_until_ready(lstm_predictor_forward(x2, params))
    ref2 = _reference_forward(x2, w_ih, b_ih, b_hh, w_tag, b_tag)
    assert out2.shape == (B2, TAG_DIM)
    assert jnp.allclose(out2, ref2, atol=1e-5, rtol=1e-5), "mismatch vs reference (B=40)"

    print("KERNEL_OK")
</pallas_src>

<mosaic_0001>
module attributes {stable_mosaic.version = 11 : i64} {
  func.func @_lstm_predictor_kernel(%arg0: i32, %arg1: memref<8x16xf32, #tpu.memory_space<vmem>>, %arg2: memref<16x128xf32, #tpu.memory_space<vmem>>, %arg3: memref<1x128xf32, #tpu.memory_space<vmem>>, %arg4: memref<32x8xf32, #tpu.memory_space<vmem>>, %arg5: memref<1x8xf32, #tpu.memory_space<vmem>>, %arg6: memref<8x8xf32, #tpu.memory_space<vmem>>) attributes {dimension_semantics = [#tpu.dimension_semantics<parallel>], iteration_bounds = array<i64: 1>, scalar_prefetch = 0 : i64, scratch_operands = 0 : i64, tpu.core_type = #tpu.core_type<tc>, window_params = [{transform_indices = @transform_0, window_bounds = array<i64: 8, 16>}, {pipeline_mode = #tpu.pipeline_mode<synchronous>, transform_indices = @transform_1, window_bounds = array<i64: 16, 128>}, {pipeline_mode = #tpu.pipeline_mode<synchronous>, transform_indices = @transform_2, window_bounds = array<i64: 1, 128>}, {pipeline_mode = #tpu.pipeline_mode<synchronous>, transform_indices = @transform_3, window_bounds = array<i64: 32, 8>}, {pipeline_mode = #tpu.pipeline_mode<synchronous>, transform_indices = @transform_4, window_bounds = array<i64: 1, 8>}, {transform_indices = @transform_5, window_bounds = array<i64: 8, 8>}]} {
    %c0 = arith.constant 0 : index
    %c0_0 = arith.constant 0 : index
    %0 = vector.load %arg1[%c0, %c0_0] : memref<8x16xf32, #tpu.memory_space<vmem>>, vector<8x16xf32>
    %c0_1 = arith.constant 0 : index
    %c0_2 = arith.constant 0 : index
    %1 = vector.load %arg2[%c0_1, %c0_2] : memref<16x128xf32, #tpu.memory_space<vmem>>, vector<16x128xf32>
    %cst = arith.constant dense<0.000000e+00> : vector<8x128xf32>
    %2 = tpu.matmul %0, %1, %cst {dimension_numbers = #tpu.dot_dimension_numbers<[1], [0], [0], [1], [0, 0, 1, 1], [], []>} : vector<8x16xf32>, vector<16x128xf32>, vector<8x128xf32> -> vector<8x128xf32>
    %c0_3 = arith.constant 0 : index
    %c0_4 = arith.constant 0 : index
    %3 = vector.load %arg3[%c0_3, %c0_4] : memref<1x128xf32, #tpu.memory_space<vmem>>, vector<1x128xf32>
    %4 = vector.broadcast %3 : vector<1x128xf32> to vector<8x128xf32>
    %5 = arith.addf %2, %4 : vector<8x128xf32>
    %6 = arith.negf %5 : vector<8x128xf32>
    %7 = math.exp %6 : vector<8x128xf32>
    %cst_5 = arith.constant 1.000000e+00 : f32
    %8 = vector.broadcast %cst_5 : f32 to vector<8x128xf32>
    %9 = arith.addf %8, %7 : vector<8x128xf32>
    %10 = arith.divf %8, %9 : vector<8x128xf32>
    %11 = vector.extract_strided_slice %10 {offsets = [0, 0], sizes = [8, 32], strides = [1, 1]} : vector<8x128xf32> to vector<8x32xf32>
    %12 = vector.extract_strided_slice %10 {offsets = [0, 64], sizes = [8, 32], strides = [1, 1]} : vector<8x128xf32> to vector<8x32xf32>
    %cst_6 = arith.constant 2.000000e+00 : f32
    %13 = vector.broadcast %cst_6 : f32 to vector<8x32xf32>
    %14 = arith.mulf %13, %12 : vector<8x32xf32>
    %cst_7 = arith.constant 1.000000e+00 : f32
    %15 = vector.broadcast %cst_7 : f32 to vector<8x32xf32>
    %16 = arith.subf %14, %15 : vector<8x32xf32>
    %17 = vector.extract_strided_slice %10 {offsets = [0, 96], sizes = [8, 32], strides = [1, 1]} : vector<8x128xf32> to vector<8x32xf32>
    %18 = arith.mulf %11, %16 : vector<8x32xf32>
    %cst_8 = arith.constant 2.000000e+00 : f32
    %19 = vector.broadcast %cst_8 : f32 to vector<8x32xf32>
    %20 = arith.mulf %19, %18 : vector<8x32xf32>
    %21 = arith.negf %20 : vector<8x32xf32>
    %22 = math.exp %21 : vector<8x32xf32>
    %cst_9 = arith.constant 1.000000e+00 : f32
    %23 = vector.broadcast %cst_9 : f32 to vector<8x32xf32>
    %24 = arith.addf %23, %22 : vector<8x32xf32>
    %25 = arith.divf %23, %24 : vector<8x32xf32>
    %cst_10 = arith.constant 2.000000e+00 : f32
    %26 = vector.broadcast %cst_10 : f32 to vector<8x32xf32>
    %27 = arith.mulf %26, %25 : vector<8x32xf32>
    %cst_11 = arith.constant 1.000000e+00 : f32
    %28 = vector.broadcast %cst_11 : f32 to vector<8x32xf32>
    %29 = arith.subf %27, %28 : vector<8x32xf32>
    %30 = arith.mulf %17, %29 : vector<8x32xf32>
    %c0_12 = arith.constant 0 : index
    %c0_13 = arith.constant 0 : index
    %31 = vector.load %arg4[%c0_12, %c0_13] : memref<32x8xf32, #tpu.memory_space<vmem>>, vector<32x8xf32>
    %cst_14 = arith.constant dense<0.000000e+00> : vector<8x8xf32>
    %32 = tpu.matmul %30, %31, %cst_14 {dimension_numbers = #tpu.dot_dimension_numbers<[1], [0], [0], [1], [0, 0, 1, 1], [], []>} : vector<8x32xf32>, vector<32x8xf32>, vector<8x8xf32> -> vector<8x8xf32>
    %c0_15 = arith.constant 0 : index
    %c0_16 = arith.constant 0 : index
    %33 = vector.load %arg5[%c0_15, %c0_16] : memref<1x8xf32, #tpu.memory_space<vmem>>, vector<1x8xf32>
    %34 = vector.broadcast %33 : vector<1x8xf32> to vector<8x8xf32>
    %35 = arith.addf %32, %34 : vector<8x8xf32>
    %c0_17 = arith.constant 0 : index
    %c0_18 = arith.constant 0 : index
    %36 = vector.load %arg6[%c0_17, %c0_18] : memref<8x8xf32, #tpu.memory_space<vmem>>, vector<8x8xf32>
    tpu.vector_store %arg6[%c0_17, %c0_18], %35 {strides = array<i32>} : memref<8x8xf32, #tpu.memory_space<vmem>>, vector<8x8xf32>,
    return
  }
  func.func @transform_0(%arg0: i32) -> (i32, i32) {
    %c0_i32 = arith.constant 0 : i32
    %c0_i32_0 = arith.constant 0 : i32
    return %arg0, %c0_i32 : i32, i32
  }
  func.func @transform_1(%arg0: i32) -> (i32, i32) {
    %c0_i32 = arith.constant 0 : i32
    %c0_i32_0 = arith.constant 0 : i32
    %c0_i32_1 = arith.constant 0 : i32
    return %c0_i32, %c0_i32_0 : i32, i32
  }
  func.func @transform_2(%arg0: i32) -> (i32, i32) {
    %c0_i32 = arith.constant 0 : i32
    %c0_i32_0 = arith.constant 0 : i32
    %c0_i32_1 = arith.constant 0 : i32
    return %c0_i32, %c0_i32_0 : i32, i32
  }
  func.func @transform_3(%arg0: i32) -> (i32, i32) {
    %c0_i32 = arith.constant 0 : i32
    %c0_i32_0 = arith.constant 0 : i32
    %c0_i32_1 = arith.constant 0 : i32
    return %c0_i32, %c0_i32_0 : i32, i32
  }
  func.func @transform_4(%arg0: i32) -> (i32, i32) {
    %c0_i32 = arith.constant 0 : i32
    %c0_i32_0 = arith.constant 0 : i32
    %c0_i32_1 = arith.constant 0 : i32
    return %c0_i32, %c0_i32_0 : i32, i32
  }
  func.func @transform_5(%arg0: i32) -> (i32, i32) {
    %c0_i32 = arith.constant 0 : i32
    %c0_i32_0 = arith.constant 0 : i32
    return %arg0, %c0_i32 : i32, i32
  }
}

</mosaic_0001>

<bundles_post_ra>
// kernel: tpu_custom_call.1
= control target key start
LH: loop header
LB: loop body
LE: loop exit
PB: predicated region body
PF: predicated region fallthrough
CT: control target
= control target key end

     0   :  { %v305_v1 = vmov 0.0   ;;  %vm306_vm0 = vmmov 0   ;;  %s371_s0 = inlined_call_operand.vmem [shape: f32[8,16], index: 0, kind: input, shape index: {}]   ;;  %s372_s1 = inlined_call_operand.vmem [shape: f32[16,128], index: 1, kind: input, shape index: {}]   ;;  %s373_s2 = inlined_call_operand.vmem [shape: f32[1,128], index: 2, kind: input, shape index: {}]   ;;  %s374_s3 = inlined_call_operand.vmem [shape: f32[32,8], index: 3, kind: input, shape index: {}]   ;;  %s375_s4 = inlined_call_operand.vmem [shape: f32[1,8], index: 4, kind: input, shape index: {}]   ;;  %s376_s5 = inlined_call_operand.hbm [shape: f32[8,8], index: 5, kind: output, shape index: {}]  }
   0x1   :  { %v23_v0 = vld [vmem:[%s372_s1 + $0x8] sm:$0xff]  ;;  %251 = vmatprep.subr.mxu0 %v305_v1  ;;  %v22_v2 = vld [vmem:[%s372_s1] sm:$0xff]  ;;  %255 = vmatprep.mubr.msk.f32.mxu0 %vm306_vm0, %v305_v1 }
   0x2   :  { %10 = vsyncpa [#allocation3], 0  ;;  %252 = vmatpush3.msra.mxu0 %v23_v0  ;;  %v21_v3 = vld [vmem:[%s371_s0] sm:$0xff]  ;;  %vm31_vm1 = vcmask 130048   ;;  %258 = vmatprep.subr.mxu1 %v305_v1  ;;  %s307_s0 = smov 64   ;;  %v135_v20 = vld [vmem:[%s374_s3 + $0x18] sm:$0xff] }
   0x3   :  { %253 = vmatprep.subr.mxu0 %v305_v1  ;;  %266 = vmatprep.mubr.msk.f32.mxu1 %vm306_vm0, %v305_v1  ;;  %v235_v4 = vld [vmem:[%s373_s2] ss:$0 sm:$0xff]  ;;  %v134_v21 = vld [vmem:[%s374_s3 + $0x10] sm:$0xff]  ;;  %v133_v22 = vld [vmem:[%s374_s3 + $0x8] sm:$0xff]  ;;  %s308_s7 = smov 96   ;;  %s309_s8 = smov 32  }
   0x4   :  { %254 = vmatpush3.msra.mxu0 %v22_v2  ;;  %259 = vmatpush3.msra.mxu1 %v135_v20  ;;  %v132_v23 = vld [vmem:[%s374_s3] sm:$0xff]  ;;  %vm146_vm2 = vcmask 261120   ;;  %s310_s3 = smov [#allocation2]   ;;  %vm219_vm3 = vcmask 64512  }
   0x5   :  { %256 = vmatmul.mubr.msk.f32.vlgmr.msra.gmra.mxu0 %vm31_vm1, %v21_v3  ;;  %260 = vmatprep.subr.mxu1 %v305_v1  ;;  %v241_v30 = vld [vmem:[%s375_s4] ss:$0 sm:$0xff]  ;;  %s227_s11 = sshll.u32 %s310_s3, 4  ;;  %s228_s11 = int_to_ptr.vmem [resolvable:$true] %s227_s11 }
   0x6   :  { %261 = vmatpush3.msra.mxu1 %v134_v21  ;;  %s283_s12 = scalar_lea.vmem %s228_s11, 128  ;;  %p288_p1 = scmp.lt.s32.totalorder %s228_s11, %s228_s11 }
   0x7   :  { %262 = vmatprep.subr.mxu1 %v305_v1  ;;  %p284_p0 = scmp.ne.s32.totalorder %s228_s11, %s283_s12  ;;  %p289_p2 = scmp.lt.s32.totalorder %s283_s12, %s283_s12 }
   0x8   :  { %263 = vmatpush3.msra.mxu1 %v133_v22 }
   0x9   :  { %264 = vmatprep.subr.mxu1 %v305_v1  ;;  %p290_p3 = por %p289_p2, %p288_p1 }
   0xa   :  { %265 = vmatpush3.msra.mxu1 %v132_v23 }
   0xb   :  { %p291_p4 = pnand %p290_p3, %p284_p0 }
  0xc5   :  { %v101_v5 = vpop.f32.mrf.mxu0 }
  0xc6   :  { %v102_v6 = vadd.f32 %v235_v4, %v101_v5 }
  0xc7   :  { %v257_v7 = vpop.f32.mrf.mxu0 }
  0xc8   :  { %v237_v8 = vmul.f32 -1.442695, %v102_v6 }
  0xca   :  { %275 = vpow2.f32 %v237_v8 }
  0xd7   :  { %v276_v9 = vpop.eup %275 }
  0xd8   :  { %v108_v10 = vadd.f32 1.0, %v276_v9 }
  0xda   :  { %277 = vrcp.f32 %v108_v10 }
  0xe7   :  { %v278_v11 = vpop.eup %277 }
  0xe8   :  { %v111_v12 = vmul.f32 2.0, %v278_v11 }
  0xea   :  { %v238_v13 = vadd.f32 -1.0, %v111_v12 }
  0xec   :  { %114 = vrot.lane.b32.xlu0 %v238_v13, %s307_s0 }
 0x15e   :  { %v115_v14 = vpop.permute.xlu0 %114 }
 0x15f   :  { %v117_v15 = vmul.f32 %v278_v11, %v115_v14 }
 0x161   :  { %v239_v16 = vmul.f32 -2.0, %v117_v15 }
 0x163   :  { %v120_v17 = vmul.f32 1.442695, %v239_v16 }
 0x165   :  { %279 = vpow2.f32 %v120_v17 }
 0x172   :  { %v280_v18 = vpop.eup %279 }
 0x173   :  { %v122_v19 = vadd.f32 1.0, %v280_v18 }
 0x175   :  { %281 = vrcp.f32 %v122_v19 }
 0x182   :  { %v282_v24 = vpop.eup %281 }
 0x183   :  { %v125_v25 = vmul.f32 2.0, %v282_v24 }
 0x185   :  { %v240_v26 = vadd.f32 -1.0, %v125_v25 }
 0x187   :  { %128 = vrot.lane.b32.xlu0 %v240_v26, %s308_s7 }
 0x1f9   :  { %v129_v27 = vpop.permute.xlu0 %128 }
 0x1fa   :  { %v131_v28 = vmul.f32 %v278_v11, %v129_v27 }
 0x1fc   :  { %144 = vrot.lane.b32.xlu1 %v131_v28, %s309_s8 }
 0x26e   :  { %v145_v29 = vpop.permute.xlu1 %144 }
 0x26f   :  { %267 = vmatmul.mubr.msk.f32.vlgmr.msra.gmra.mxu1 %vm146_vm2, %v145_v29 }
 0x32f   :  { %v215_v31 = vpop.f32.mrf.mxu1 }
 0x330   :  { %v216_v32 = vadd.f32 %v241_v30, %v215_v31 }
 0x331   :  { %v268_v33 = vpop.f32.mrf.mxu1 }
 0x332   :  { %220 = vst.msk [vmem:[#allocation2] sm:$0xff] %vm219_vm3, %v216_v32 }
 0x333   :  { %294 = shalt.err (!%p291_p4)
}
 0x334   :  { %230 = dma.vmem_to_hbm [thread:$0]  %s228_s11, 128, %s376_s5, [#allocation3]  }
 0x335   :  { %303 = dma.done.wait [#allocation3], 128  }
 0x336   :  { %304 = vsyncadd [#allocation3], 4294967168 }
 0x337   :  { %234 = vsyncpa [#allocation3], 1 }

</bundles_post_ra>
